<compile_context>
chip_gen: v7x
topology: tpu7x:2x2x1
jax: 0.10.0
libtpu: 0.0.40
codegen_flags: <defaults>
</compile_context>

<pallas_src>
import jax
import jax.numpy as jnp
from jax.experimental import pallas as pl
from jax.experimental.pallas import tpu as pltpu


_LANE = 128
_DEFAULT_BLOCK_BUDGET = 8 << 20   # per-block byte budget for the x / out tiles
_VMEM_LIMIT_BYTES = 48 << 20      # explicit scoped-VMEM limit (fits v7x 64 MiB)


def _drop_path_kernel(s_ref, x_ref, o_ref):
    # s_ref: (TB, 1) per-sample scale, x_ref/o_ref: (TB, TL) tile.
    # Single multiply in the storage dtype; (TB, 1) broadcasts along lanes.
    o_ref[...] = x_ref[...] * s_ref[...]


def _num_tensorcores() -> int:
    """Best-effort detection of dual-TensorCore chips (v7x / megacore)."""
    try:
        kind = jax.devices()[0].device_kind.lower()
    except Exception:  # pragma: no cover - defensive
        return 1
    for tag in ("v7", "v5p", "v4"):
        if tag in kind:
            return 2
    return 1


def _round_down(v: int, m: int) -> int:
    return (v // m) * m


def _pick_tiles(b: int, chw: int, itemsize: int, budget: int):
    """Largest (tb, tl) block under `budget` bytes.

    tb is a multiple of the dtype's sublane packing (or == b), tl is a
    multiple of 128 (or == chw).  Tiles need NOT divide the array: the grid
    uses pl.cdiv and Pallas masks the ragged edge blocks, so no padding or
    post-slice copies are required.
    """
    sublane = max(8, 32 // itemsize)
    budget_elems = max(1, budget // itemsize)

    tl_max = chw if chw < _LANE else _round_down(chw, _LANE)
    tb_max = b if b < sublane else _round_down(b, sublane)
    tb_min = min(tb_max, sublane)

    tl = min(tl_max, max(_LANE, _round_down(budget_elems // max(tb_min, 1), _LANE)))
    tl = max(1, tl)
    tb = min(tb_max, max(tb_min, _round_down(budget_elems // tl, sublane)))
    tb = max(1, tb)
    return tb, tl, sublane


def _split_for_cores(tb: int, tl: int, b: int, chw: int, sublane: int,
                     num_cores: int):
    """Ensure >= 2 blocks on a parallel axis when >1 TensorCore is present."""
    if num_cores < 2:
        return tb, tl
    if pl.cdiv(b, tb) * pl.cdiv(chw, tl) >= 2:
        return tb, tl
    # Prefer splitting the lane axis: keeps the scale-column block index
    # constant across the (innermost) lane grid dimension.
    if tl >= 2 * _LANE:
        tl = max(_LANE, _round_down(pl.cdiv(tl, 2), _LANE))
    elif tb >= 2 * sublane:
        # Only split batch if the result stays a multiple of the sublane
        # packing (otherwise the BlockSpec would be illegal for b > sublane).
        tb = max(sublane, _round_down(pl.cdiv(tb, 2), sublane))
    return tb, tl


def drop_path_pallas(x, drop_prob: float = 0.0, training: bool = False,
                     key=None, *, min_pallas_bytes: int = 1 << 20,
                     block_budget_bytes: int = _DEFAULT_BLOCK_BUDGET,
                     donate_input: bool = False):
    """Pallas implementation of drop_path (per-sample stochastic depth).

    Matches the PyTorch reference: returns only the output tensor.
    """
    if drop_prob == 0.0 or not training:
        return x
    if key is None:
        raise ValueError(
            "drop_path_pallas needs a PRNG key when training with drop_prob > 0")

    keep_prob = 1.0 - float(drop_prob)
    B = x.shape[0]

    # Per-sample random keep mask, identical semantics to the PyTorch code,
    # computed in float32 so low-precision dtypes don't bias the drop rate.
    u = jax.random.uniform(key, (B,), dtype=jnp.float32)
    mask = jnp.floor(keep_prob + u)                    # 0.0 or 1.0 per sample
    scale = (mask / keep_prob).astype(x.dtype)         # (B,)

    nbytes = x.size * x.dtype.itemsize
    if nbytes < min_pallas_bytes:
        # Small-problem fallback: XLA fuses the broadcast multiply for free.
        return (x * scale.reshape((B,) + (1,) * (x.ndim - 1))).astype(x.dtype)

    flat = x.reshape(B, -1)                            # view, no HBM copy
    chw = flat.shape[1]
    itemsize = x.dtype.itemsize

    tb, tl, sublane = _pick_tiles(B, chw, itemsize, block_budget_bytes)
    tb, tl = _split_for_cores(tb, tl, B, chw, sublane, _num_tensorcores())
    grid = (pl.cdiv(B, tb), pl.cdiv(chw, tl))          # ragged edges masked

    extra = {}
    if donate_input:
        # Output aliases the flattened input (a view of the caller's x), so
        # HBM footprint is halved.  Off by default: callers that still read x
        # afterwards must not enable it.
        extra["input_output_aliases"] = {1: 0}

    out_flat = pl.pallas_call(
        _drop_path_kernel,
        out_shape=jax.ShapeDtypeStruct((B, chw), x.dtype),
        grid=grid,
        in_specs=[
            pl.BlockSpec((tb, 1), lambda i, j: (i, 0)),    # per-sample scale col
            pl.BlockSpec((tb, tl), lambda i, j: (i, j)),   # dense (TB, TL) tile
        ],
        out_specs=pl.BlockSpec((tb, tl), lambda i, j: (i, j)),
        compiler_params=pltpu.CompilerParams(
            dimension_semantics=("parallel", "parallel"),
            vmem_limit_bytes=_VMEM_LIMIT_BYTES,
        ),
        **extra,
    )(scale.reshape(B, 1), flat)

    return out_flat.reshape(x.shape)                   # view, no HBM copy


class DropPath:
    """Mirror of the PyTorch DropPath module (no parameters)."""

    def __init__(self, drop_prob=None):
        self.drop_prob = drop_prob
        self.training = True

    def __call__(self, x, key=None):
        dp = 0.0 if self.drop_prob is None else float(self.drop_prob)
        return drop_path_pallas(x, dp, self.training, key)


def _reference(x, drop_prob, key):
    """Plain-JAX replica of the kernel's numerics (same key / mask recipe)."""
    keep_prob = 1.0 - float(drop_prob)
    B = x.shape[0]
    u = jax.random.uniform(key, (B,), dtype=jnp.float32)
    scale = (jnp.floor(keep_prob + u) / keep_prob).astype(x.dtype)
    return x * scale.reshape((B,) + (1,) * (x.ndim - 1))


if __name__ == "__main__":
    key = jax.random.PRNGKey(0)
    k_x, k_d, k_x2, k_d2, k_x3, k_d3, k_x4, k_d4 = jax.random.split(key, 8)
    drop_prob = 0.3

    # --- Case 1: the module's nominal small shape (B=2, C=4, H=W=16) --------
    x = jax.random.normal(k_x, (2, 4, 16, 16), dtype=jnp.float32)
    ref = _reference(x, drop_prob, k_d)
    out = jax.block_until_ready(
        drop_path_pallas(x, drop_prob, training=True, key=k_d,
                         min_pallas_bytes=0))          # force the Pallas path
    assert out.shape == x.shape and out.dtype == x.dtype
    assert jnp.allclose(out, ref, atol=1e-6)

    # Default path uses the small-problem JAX fallback; must match.
    out_fb = jax.block_until_ready(
        drop_path_pallas(x, drop_prob, training=True, key=k_d))
    assert jnp.allclose(out_fb, ref, atol=1e-6)

    # Eval mode / drop_prob == 0 returns the input unchanged.
    module = DropPath(drop_prob)
    module.training = False
    assert jnp.array_equal(module(x), x)

    # --- Case 2: sublane-dense multi-sample grid (B multiple of 8) ----------
    x2 = jax.random.normal(k_x2, (8, 16, 32, 32), dtype=jnp.float32)
    ref2 = _reference(x2, drop_prob, k_d2)
    out2 = jax.block_until_ready(
        drop_path_pallas(x2, drop_prob, training=True, key=k_d2,
                         min_pallas_bytes=0))
    assert out2.shape == x2.shape and out2.dtype == x2.dtype
    assert jnp.allclose(out2, ref2, atol=1e-6)

    # --- Case 3: non-128-aligned CHW and non-multiple-of-8 batch (masked
    #             ragged edge blocks, no padding / slicing copies) -----------
    x3 = jax.random.normal(k_x3, (3, 3, 7, 7), dtype=jnp.float32)   # CHW = 147
    ref3 = _reference(x3, drop_prob, k_d3)
    out3 = jax.block_until_ready(
        drop_path_pallas(x3, drop_prob, training=True, key=k_d3,
                         min_pallas_bytes=0))
    assert out3.shape == x3.shape and out3.dtype == x3.dtype
    assert jnp.allclose(out3, ref3, atol=1e-6)

    # --- Case 4: bfloat16, odd shape (sublane packing = 16, ragged lanes) ---
    x4 = jax.random.normal(k_x4, (5, 6, 9, 11), dtype=jnp.bfloat16)  # CHW = 594
    ref4 = _reference(x4, drop_prob, k_d4)
    out4 = jax.block_until_ready(
        drop_path_pallas(x4, drop_prob, training=True, key=k_d4,
                         min_pallas_bytes=0))
    assert out4.shape == x4.shape and out4.dtype == x4.dtype
    assert jnp.allclose(out4.astype(jnp.float32), ref4.astype(jnp.float32),
                        atol=1e-2)

    print("KERNEL_OK")
</pallas_src>

<mosaic_0001>
module attributes {stable_mosaic.version = 11 : i64} {
  func.func @_drop_path_kernel(%arg0: i32, %arg1: i32, %arg2: memref<2x1xf32, #tpu.memory_space<vmem>>, %arg3: memref<2x1024xf32, #tpu.memory_space<vmem>>, %arg4: memref<2x1024xf32, #tpu.memory_space<vmem>>) attributes {dimension_semantics = [#tpu.dimension_semantics<parallel>, #tpu.dimension_semantics<parallel>], iteration_bounds = array<i64: 1, 1>, scalar_prefetch = 0 : i64, scratch_operands = 0 : i64, tpu.core_type = #tpu.core_type<tc>, window_params = [{transform_indices = @transform_0, window_bounds = array<i64: 2, 1>}, {transform_indices = @transform_1, window_bounds = array<i64: 2, 1024>}, {transform_indices = @transform_2, window_bounds = array<i64: 2, 1024>}]} {
    %c0 = arith.constant 0 : index
    %c0_0 = arith.constant 0 : index
    %0 = vector.load %arg3[%c0, %c0_0] : memref<2x1024xf32, #tpu.memory_space<vmem>>, vector<2x1024xf32>
    %c0_1 = arith.constant 0 : index
    %c0_2 = arith.constant 0 : index
    %1 = vector.load %arg2[%c0_1, %c0_2] : memref<2x1xf32, #tpu.memory_space<vmem>>, vector<2x1xf32>
    %2 = vector.broadcast %1 : vector<2x1xf32> to vector<2x1024xf32>
    %3 = arith.mulf %0, %2 : vector<2x1024xf32>
    %c0_3 = arith.constant 0 : index
    %c0_4 = arith.constant 0 : index
    %4 = vector.load %arg4[%c0_3, %c0_4] : memref<2x1024xf32, #tpu.memory_space<vmem>>, vector<2x1024xf32>
    tpu.vector_store %arg4[%c0_3, %c0_4], %3 {strides = array<i32>} : memref<2x1024xf32, #tpu.memory_space<vmem>>, vector<2x1024xf32>,
    return
  }
  func.func @transform_0(%arg0: i32, %arg1: i32) -> (i32, i32) {
    %c0_i32 = arith.constant 0 : i32
    %c0_i32_0 = arith.constant 0 : i32
    return %arg0, %c0_i32 : i32, i32
  }
  func.func @transform_1(%arg0: i32, %arg1: i32) -> (i32, i32) {
    %c0_i32 = arith.constant 0 : i32
    return %arg0, %arg1 : i32, i32
  }
  func.func @transform_2(%arg0: i32, %arg1: i32) -> (i32, i32) {
    %c0_i32 = arith.constant 0 : i32
    return %arg0, %arg1 : i32, i32
  }
}

</mosaic_0001>

<bundles_post_ra>
// kernel: tpu_custom_call.1
= control target key start
LH: loop header
LB: loop body
LE: loop exit
PB: predicated region body
PF: predicated region fallthrough
CT: control target
= control target key end

     0   :  { %7 = vsyncpa [#allocation3], 0  ;;  %s157_s0 = inlined_call_operand.vmem [shape: f32[2,1], index: 0, kind: input, shape index: {}]   ;;  %s158_s1 = inlined_call_operand.hbm [shape: f32[2,1024], index: 1, kind: input, shape index: {}]   ;;  %s159_s2 = inlined_call_operand.hbm [shape: f32[2,1024], index: 2, kind: output, shape index: {}]  }
   0x1   :  { %8 = vsyncpa [#allocation4], 0  ;;  %s111_s9 = smov [#allocation2]   ;;  %s63_s13 = scalar_lea.hbm %s158_s1, 256 }
   0x2   :  { %s17_s10 = sshll.u32 %s111_s9, 4  ;;  %p64_p0 = scmp.ne.s32.totalorder %s158_s1, %s63_s13  ;;  %s18_s10 = int_to_ptr.vmem [resolvable:$true] %s17_s10 }
   0x3   :  { %p67_p1 = scmp.lt.u32.totalorder %s63_s13, %s158_s1 }
   0x5   :  { %p69_p2 = pnand %p67_p1, %p64_p0 }
   0x7   :  { %72 = shalt.err (!%p69_p2)
}
   0x8   :  { %s73_s18 = scalar_lea.vmem %s18_s10, 256  ;;  %p78_p4 = scmp.lt.s32.totalorder %s18_s10, %s18_s10 }
   0x9   :  { %p74_p3 = scmp.ne.s32.totalorder %s18_s10, %s73_s18  ;;  %p79_p5 = scmp.lt.s32.totalorder %s73_s18, %s73_s18 }
   0xb   :  { %p80_p6 = por %p79_p5, %p78_p4 }
   0xd   :  { %p81_p7 = pnand %p80_p6, %p74_p3 }
   0xf   :  { %84 = shalt.err (!%p81_p7)
}
  0x10   :  { %20 = dma.hbm_to_vmem [thread:$0]  %s158_s1, 256, %s18_s10, [#allocation3]  }
  0x11   :  { %107 = dma.done.wait [#allocation3], 256  }
  0x12   :  { %108 = vsyncadd [#allocation3], 4294967040  ;;  %v112_v0 = vmov 0   ;;  %v26_v1 = vld [vmem:[%s157_s0] sm:$0x3]  ;;  %v34_v4 = vlaneseq  ;;  %v25_v10 = vld [vmem:[#allocation2 + $0x8] sm:$0xff] }
  0x13   :  { %62 = vset.pattern.permute.xlu0 %v112_v0  ;;  %v113_v2 = vmov 269488144   ;;  %v24_v9 = vld [vmem:[#allocation2] sm:$0xff]  ;;  %s114_s23 = smov [#allocation5]  }
  0x14   :  { %29 = vperm.xlu0 %62, %v26_v1   ;;  %v32_v3 = vunpack.c.l.s4 %v113_v2  ;;  %v35_v6 = vshrl.u32 %v34_v4, 7  ;;  %s49_s1 = sshll.u32 %s114_s23, 4  ;;  %s50_s1 = int_to_ptr.vmem [resolvable:$true] %s49_s1 }
  0x15   :  { %s85_s24 = scalar_lea.vmem %s50_s1, 256  ;;  %p90_p9 = scmp.lt.s32.totalorder %s50_s1, %s50_s1 }
  0x16   :  { %v33_v5 = vunpack.c.0.s8 %v32_v3  ;;  %p86_p8 = scmp.ne.s32.totalorder %s50_s1, %s85_s24  ;;  %p91_p10 = scmp.lt.s32.totalorder %s85_s24, %s85_s24 }
  0x18   :  { %v36_v7 = vsub.s32 %v33_v5, %v35_v6  ;;  %p92_p11 = por %p91_p10, %p90_p9 }
  0x1a   :  { %p93_p12 = pnand %p92_p11, %p86_p8 }
  0x93   :  { %v30_v8 = vpop.permute.xlu0 %29 }
  0x94   :  { %v37_v11 = vrot.slane %v30_v8, %v36_v7 }
  0x96   :  { %v39_v12 = vmul.f32 %v37_v11, %v24_v9  ;;  %v40_v13 = vmul.f32 %v37_v11, %v25_v10 }
  0x98   :  { %41 = vst [vmem:[#allocation5] sm:$0xff] %v39_v12  ;;  %42 = vst [vmem:[#allocation5 + $0x8] sm:$0xff] %v40_v13 }
  0x99   :  { %96 = shalt.err (!%p93_p12)
}
  0x9a   :  { %s97_s26 = scalar_lea.hbm %s159_s2, 256 }
  0x9b   :  { %p98_p13 = scmp.ne.s32.totalorder %s159_s2, %s97_s26  ;;  %p101_p0 = scmp.lt.u32.totalorder %s97_s26, %s159_s2 }
  0x9d   :  { %p103_p1 = pnand %p101_p0, %p98_p13 }
  0x9f   :  { %106 = shalt.err (!%p103_p1)
}
  0xa0   :  { %52 = dma.vmem_to_hbm [thread:$0]  %s50_s1, 256, %s159_s2, [#allocation4]  }
  0xa1   :  { %109 = dma.done.wait [#allocation4], 256  }
  0xa2   :  { %110 = vsyncadd [#allocation4], 4294967040 }
  0xa3   :  { %56 = vsyncpa [#allocation3], 1 }
  0xa4   :  { %57 = vsyncpa [#allocation4], 1 }

</bundles_post_ra>
